<compile_context>
chip_gen: v7x
topology: tpu7x:2x2x1
jax: 0.10.0
libtpu: 0.0.40
codegen_flags: <defaults>
</compile_context>

<pallas_src>
import jax
import jax.numpy as jnp
from jax.experimental import pallas as pl
from jax.experimental.pallas import tpu as pltpu


def _emissions_mlp_kernel(x_ref, w1_ref, b1_ref, w2_ref, b2_ref, w3_ref, b3_ref, o_ref):
    """Batch-on-lanes MLP tile.

    x_ref : (6,  TB) bf16   feature-major input tile (batch on lanes)
    w1    : (64, 6)  bf16   w2: (128, 64) bf16   w3: (1, 128) bf16
    b1    : (64, 1)  ew     b2: (128, 1)  ew     b3: (1, 1) f32 scalar in SMEM
    o_ref : (1,  TB) f32
    ew = bf16 on chips with a bf16 VALU (v6e/v7x), f32 otherwise (v5e & older).
    """
    ew = b1_ref.dtype

    # Layer 1: Linear(6, 64) + ReLU          (Dropout(0.2) is identity in eval)
    h1 = jnp.dot(w1_ref[...], x_ref[...], preferred_element_type=jnp.float32)
    h1 = jnp.maximum(h1.astype(ew) + b1_ref[...], 0).astype(jnp.bfloat16)

    # Layer 2: Linear(64, 128) + ReLU        (Dropout(0.3) is identity in eval)
    h2 = jnp.dot(w2_ref[...], h1, preferred_element_type=jnp.float32)
    h2 = jnp.maximum(h2.astype(ew) + b2_ref[...], 0).astype(jnp.bfloat16)

    # Layer 3: Linear(128, 1) on the MXU (M=1) -- the MXU slot is nearly idle
    # after the two tiny matmuls; this removes ~128*TB f32 VPU multiplies plus
    # an XLU sublane reduce from the VALU-bound path.
    out = jnp.dot(w3_ref[...], h2, preferred_element_type=jnp.float32)
    o_ref[...] = (out + b3_ref[0, 0]).astype(o_ref.dtype)


def _bf16_valu_available():
    """bf16 elementwise is only a win where the VPU has native bf16 (v6e/v7x)."""
    try:
        kind = jax.devices()[0].device_kind.lower()
    except Exception:
        return True
    return ("v6" in kind) or ("v7" in kind)


def _choose_batch_tiling(batch, tb_max=8192):
    """Returns (b_pad, tb): tb a multiple of 128, b_pad = tb * steps >= batch.

    Waste-aware: tb = 128*ceil(lanes/steps), so padding past the 128-lane
    rounding is < 128*(steps-1) samples.  steps is forced to an even value >= 2
    once batch >= 256 so the "parallel" grid axis feeds both v7x TensorCores.
    """
    lanes = pl.cdiv(max(batch, 1), 128)        # number of 128-lane groups
    b_min = lanes * 128
    steps = pl.cdiv(b_min, tb_max)
    if b_min >= 256:
        steps = max(steps, 2)
        steps += steps & 1                     # even split across the 2 TCs
    tb = 128 * pl.cdiv(lanes, steps)           # multiple of 128, <= tb_max
    return tb * steps, tb


def emissions_net_forward_feature_major(x_fm, params, *, tb_max=8192):
    """Core entry point.  x_fm: (6, B) feature-major input.  Returns (1, B) f32.

    Callers that can produce x feature-major (e.g. store their dataset
    transposed) should use this directly and skip the wrapper transpose.
    """
    F, B = x_fm.shape
    assert F == 6, f"EmissionsNet expects 6 input features, got {F}"

    b_pad, tb = _choose_batch_tiling(B, tb_max)
    ew = jnp.bfloat16 if _bf16_valu_available() else jnp.float32

    x_fm = x_fm.astype(jnp.bfloat16)
    if b_pad != B:
        x_fm = jnp.pad(x_fm, ((0, 0), (0, b_pad - B)))

    # Kernel-layout parameters (PyTorch (out, in) weights).
    w1 = params["w1"].astype(jnp.bfloat16)                 # (64, 6)
    w2 = params["w2"].astype(jnp.bfloat16)                 # (128, 64)
    w3 = params["w3"].reshape(1, 128).astype(jnp.bfloat16)  # (1, 128)
    b1 = params["b1"].reshape(64, 1).astype(ew)
    b2 = params["b2"].reshape(128, 1).astype(ew)
    b3 = params["b3"].reshape(1, 1).astype(jnp.float32)     # scalar -> SMEM

    const = lambda i: (0, 0)                                # resident weights

    out_fm = pl.pallas_call(
        _emissions_mlp_kernel,
        out_shape=jax.ShapeDtypeStruct((1, b_pad), jnp.float32),
        grid=(b_pad // tb,),
        in_specs=[
            pl.BlockSpec((6, tb), lambda i: (0, i)),                  # x tile
            pl.BlockSpec((64, 6), const),                             # w1
            pl.BlockSpec((64, 1), const),                             # b1
            pl.BlockSpec((128, 64), const),                           # w2
            pl.BlockSpec((128, 1), const),                            # b2
            pl.BlockSpec((1, 128), const),                            # w3
            pl.BlockSpec((1, 1), const, memory_space=pltpu.SMEM),     # b3
        ],
        out_specs=pl.BlockSpec((1, tb), lambda i: (0, i)),
        compiler_params=pltpu.CompilerParams(
            dimension_semantics=("parallel",),
            vmem_limit_bytes=48 * 1024 * 1024,
        ),
    )(x_fm, w1, b1, w2, b2, w3, b3)

    return out_fm[:, :B]                                    # (1, B) f32


def emissions_net_forward(x, params, *, tb_max=8192):
    """PyTorch-layout entry point.  x: (B, 6) float.  Returns (B, 1) f32."""
    # The only out-of-kernel data movement: one fused cast+transpose of x.
    out_fm = emissions_net_forward_feature_major(
        x.astype(jnp.bfloat16).T, params, tb_max=tb_max)
    return out_fm.T                                          # (B, 1)


def init_params(key):
    """nn.Linear-style init; weights stored PyTorch-layout (out, in)."""
    keys = jax.random.split(key, 6)

    def linear(kw, kb, fan_in, fan_out):
        bound = 1.0 / jnp.sqrt(jnp.float32(fan_in))
        w = jax.random.uniform(kw, (fan_out, fan_in), jnp.float32, -bound, bound)
        b = jax.random.uniform(kb, (fan_out,), jnp.float32, -bound, bound)
        return w, b

    w1, b1 = linear(keys[0], keys[1], 6, 64)
    w2, b2 = linear(keys[2], keys[3], 64, 128)
    w3, b3 = linear(keys[4], keys[5], 128, 1)
    return {"w1": w1, "b1": b1, "w2": w2, "b2": b2, "w3": w3, "b3": b3}


def reference_forward(x, params):
    h1 = jnp.maximum(x @ params["w1"].T + params["b1"], 0.0)
    h2 = jnp.maximum(h1 @ params["w2"].T + params["b2"], 0.0)
    return h2 @ params["w3"].T + params["b3"]


if __name__ == "__main__":
    key = jax.random.PRNGKey(0)
    k_params, k_x1, k_x2 = jax.random.split(key, 3)
    params = init_params(k_params)

    # Small batch (single-tile path).
    x_small = jax.random.normal(k_x1, (8, 6), jnp.float32)
    out_small = jax.block_until_ready(emissions_net_forward(x_small, params))
    ref_small = reference_forward(x_small, params)
    assert out_small.shape == (8, 1), out_small.shape
    assert jnp.allclose(out_small, ref_small, atol=5e-2, rtol=5e-2), (
        "small-batch mismatch, max abs err = "
        f"{float(jnp.max(jnp.abs(out_small - ref_small)))}")

    # Batch just over a 256-lane boundary (multi-step grid + padding path).
    x_big = jax.random.normal(k_x2, (300, 6), jnp.float32)
    out_big = jax.block_until_ready(emissions_net_forward(x_big, params))
    ref_big = reference_forward(x_big, params)
    assert out_big.shape == (300, 1), out_big.shape
    assert jnp.allclose(out_big, ref_big, atol=5e-2, rtol=5e-2), (
        "multi-tile mismatch, max abs err = "
        f"{float(jnp.max(jnp.abs(out_big - ref_big)))}")

    print("KERNEL_OK")
</pallas_src>

<mosaic_0001>
module attributes {stable_mosaic.version = 11 : i64} {
  func.func @_emissions_mlp_kernel(%arg0: i32, %arg1: memref<6x128xbf16, #tpu.memory_space<vmem>>, %arg2: memref<64x6xbf16, #tpu.memory_space<vmem>>, %arg3: memref<64x1xf32, #tpu.memory_space<vmem>>, %arg4: memref<128x64xbf16, #tpu.memory_space<vmem>>, %arg5: memref<128x1xf32, #tpu.memory_space<vmem>>, %arg6: memref<1x128xbf16, #tpu.memory_space<vmem>>, %arg7: memref<1x1xf32, #tpu.memory_space<smem>>, %arg8: memref<1x128xf32, #tpu.memory_space<vmem>>) attributes {dimension_semantics = [#tpu.dimension_semantics<parallel>], iteration_bounds = array<i64: 1>, scalar_prefetch = 0 : i64, scratch_operands = 0 : i64, tpu.core_type = #tpu.core_type<tc>, window_params = [{transform_indices = @transform_0, window_bounds = array<i64: 6, 128>}, {pipeline_mode = #tpu.pipeline_mode<synchronous>, transform_indices = @transform_1, window_bounds = array<i64: 64, 6>}, {pipeline_mode = #tpu.pipeline_mode<synchronous>, transform_indices = @transform_2, window_bounds = array<i64: 64, 1>}, {pipeline_mode = #tpu.pipeline_mode<synchronous>, transform_indices = @transform_3, window_bounds = array<i64: 128, 64>}, {pipeline_mode = #tpu.pipeline_mode<synchronous>, transform_indices = @transform_4, window_bounds = array<i64: 128, 1>}, {pipeline_mode = #tpu.pipeline_mode<synchronous>, transform_indices = @transform_5, window_bounds = array<i64: 1, 128>}, {transform_indices = @transform_6, window_bounds = array<i64: 1, 1>}, {transform_indices = @transform_7, window_bounds = array<i64: 1, 128>}]} {
    %c0 = arith.constant 0 : index
    %c0_0 = arith.constant 0 : index
    %0 = vector.load %arg2[%c0, %c0_0] : memref<64x6xbf16, #tpu.memory_space<vmem>>, vector<64x6xbf16>
    %c0_1 = arith.constant 0 : index
    %c0_2 = arith.constant 0 : index
    %1 = vector.load %arg1[%c0_1, %c0_2] : memref<6x128xbf16, #tpu.memory_space<vmem>>, vector<6x128xbf16>
    %cst = arith.constant dense<0.000000e+00> : vector<64x128xf32>
    %2 = tpu.matmul %0, %1, %cst {dimension_numbers = #tpu.dot_dimension_numbers<[1], [0], [0], [1], [0, 0, 1, 1], [], []>} : vector<64x6xbf16>, vector<6x128xbf16>, vector<64x128xf32> -> vector<64x128xf32>
    %c0_3 = arith.constant 0 : index
    %c0_4 = arith.constant 0 : index
    %3 = vector.load %arg3[%c0_3, %c0_4] : memref<64x1xf32, #tpu.memory_space<vmem>>, vector<64x1xf32>
    %4 = vector.broadcast %3 : vector<64x1xf32> to vector<64x128xf32>
    %5 = arith.addf %2, %4 : vector<64x128xf32>
    %cst_5 = arith.constant 0.000000e+00 : f32
    %6 = vector.broadcast %cst_5 : f32 to vector<64x128xf32>
    %7 = arith.maximumf %5, %6 : vector<64x128xf32>
    %8 = arith.truncf %7 : vector<64x128xf32> to vector<64x128xbf16>
    %c0_6 = arith.constant 0 : index
    %c0_7 = arith.constant 0 : index
    %9 = vector.load %arg4[%c0_6, %c0_7] : memref<128x64xbf16, #tpu.memory_space<vmem>>, vector<128x64xbf16>
    %cst_8 = arith.constant dense<0.000000e+00> : vector<128x128xf32>
    %10 = tpu.matmul %9, %8, %cst_8 {dimension_numbers = #tpu.dot_dimension_numbers<[1], [0], [0], [1], [0, 0, 1, 1], [], []>} : vector<128x64xbf16>, vector<64x128xbf16>, vector<128x128xf32> -> vector<128x128xf32>
    %c0_9 = arith.constant 0 : index
    %c0_10 = arith.constant 0 : index
    %11 = vector.load %arg5[%c0_9, %c0_10] : memref<128x1xf32, #tpu.memory_space<vmem>>, vector<128x1xf32>
    %12 = vector.broadcast %11 : vector<128x1xf32> to vector<128x128xf32>
    %13 = arith.addf %10, %12 : vector<128x128xf32>
    %cst_11 = arith.constant 0.000000e+00 : f32
    %14 = vector.broadcast %cst_11 : f32 to vector<128x128xf32>
    %15 = arith.maximumf %13, %14 : vector<128x128xf32>
    %16 = arith.truncf %15 : vector<128x128xf32> to vector<128x128xbf16>
    %c0_12 = arith.constant 0 : index
    %c0_13 = arith.constant 0 : index
    %17 = vector.load %arg6[%c0_12, %c0_13] : memref<1x128xbf16, #tpu.memory_space<vmem>>, vector<1x128xbf16>
    %cst_14 = arith.constant dense<0.000000e+00> : vector<1x128xf32>
    %18 = tpu.matmul %17, %16, %cst_14 {dimension_numbers = #tpu.dot_dimension_numbers<[1], [0], [0], [1], [0, 0, 1, 1], [], []>} : vector<1x128xbf16>, vector<128x128xbf16>, vector<1x128xf32> -> vector<1x128xf32>
    %c0_15 = arith.constant 0 : index
    %c0_16 = arith.constant 0 : index
    %19 = memref.load %arg7[%c0_15, %c0_16] : memref<1x1xf32, #tpu.memory_space<smem>>
    %20 = vector.broadcast %19 : f32 to vector<1x128xf32>
    %21 = arith.addf %18, %20 : vector<1x128xf32>
    %c0_17 = arith.constant 0 : index
    %c0_18 = arith.constant 0 : index
    %22 = vector.load %arg8[%c0_17, %c0_18] : memref<1x128xf32, #tpu.memory_space<vmem>>, vector<1x128xf32>
    tpu.vector_store %arg8[%c0_17, %c0_18], %21 {strides = array<i32>} : memref<1x128xf32, #tpu.memory_space<vmem>>, vector<1x128xf32>,
    return
  }
  func.func @transform_0(%arg0: i32) -> (i32, i32) {
    %c0_i32 = arith.constant 0 : i32
    %c0_i32_0 = arith.constant 0 : i32
    return %c0_i32, %arg0 : i32, i32
  }
  func.func @transform_1(%arg0: i32) -> (i32, i32) {
    %c0_i32 = arith.constant 0 : i32
    %c0_i32_0 = arith.constant 0 : i32
    %c0_i32_1 = arith.constant 0 : i32
    return %c0_i32, %c0_i32_0 : i32, i32
  }
  func.func @transform_2(%arg0: i32) -> (i32, i32) {
    %c0_i32 = arith.constant 0 : i32
    %c0_i32_0 = arith.constant 0 : i32
    %c0_i32_1 = arith.constant 0 : i32
    return %c0_i32, %c0_i32_0 : i32, i32
  }
  func.func @transform_3(%arg0: i32) -> (i32, i32) {
    %c0_i32 = arith.constant 0 : i32
    %c0_i32_0 = arith.constant 0 : i32
    %c0_i32_1 = arith.constant 0 : i32
    return %c0_i32, %c0_i32_0 : i32, i32
  }
  func.func @transform_4(%arg0: i32) -> (i32, i32) {
    %c0_i32 = arith.constant 0 : i32
    %c0_i32_0 = arith.constant 0 : i32
    %c0_i32_1 = arith.constant 0 : i32
    return %c0_i32, %c0_i32_0 : i32, i32
  }
  func.func @transform_5(%arg0: i32) -> (i32, i32) {
    %c0_i32 = arith.constant 0 : i32
    %c0_i32_0 = arith.constant 0 : i32
    %c0_i32_1 = arith.constant 0 : i32
    return %c0_i32, %c0_i32_0 : i32, i32
  }
  func.func @transform_6(%arg0: i32) -> (i32, i32) {
    %c0_i32 = arith.constant 0 : i32
    %c0_i32_0 = arith.constant 0 : i32
    %c0_i32_1 = arith.constant 0 : i32
    return %c0_i32, %c0_i32_0 : i32, i32
  }
  func.func @transform_7(%arg0: i32) -> (i32, i32) {
    %c0_i32 = arith.constant 0 : i32
    %c0_i32_0 = arith.constant 0 : i32
    return %c0_i32, %arg0 : i32, i32
  }
}

</mosaic_0001>

<bundles_post_ra>
// kernel: tpu_custom_call.1
= control target key start
LH: loop header
LB: loop body
LE: loop exit
PB: predicated region body
PF: predicated region fallthrough
CT: control target
= control target key end

     0   :  { %vm119_vm0 = vcmask 1042432   ;;  %vm106_vm1 = vcmask 48128   ;;  %v703_v5 = vmov 0   ;;  %s897_s0 = inlined_call_operand.vmem [shape: bf16[6,128], index: 0, kind: input, shape index: {}]   ;;  %s898_s1 = inlined_call_operand.vmem [shape: bf16[64,6], index: 1, kind: input, shape index: {}]   ;;  %s899_s2 = inlined_call_operand.vmem [shape: f32[64,1], index: 2, kind: input, shape index: {}]   ;;  %s900_s3 = inlined_call_operand.vmem [shape: bf16[128,64], index: 3, kind: input, shape index: {}]   ;;  %s901_s4 = inlined_call_operand.vmem [shape: f32[128,1], index: 4, kind: input, shape index: {}]   ;;  %s902_s5 = inlined_call_operand.vmem [shape: bf16[1,128], index: 5, kind: input, shape index: {}]   ;;  %s903_s6 = inlined_call_operand.<no memory space> [shape: f32[1,1], index: 6, kind: input, shape index: {}]   ;;  %s904_s7 = inlined_call_operand.hbm [shape: f32[1,128], index: 7, kind: output, shape index: {}]  }
   0x1   :  { %v37_v0 = vld [vmem:[%s897_s0] sm:$0x7]  ;;  %v668_v3 = vld [vmem:[%s898_s1 + $0x8] sm:$0xff]   ;;  %v669_v4 = vld [vmem:[%s898_s1 + $0x10] sm:$0xff]   ;;  %665 = vset.pattern.permute.xlu0 %v703_v5  ;;  %666 = vset.pattern.permute.xlu1 %v703_v5 }
   0x2   :  { %v667_v1 = vld [vmem:[%s898_s1] sm:$0xff]   ;;  %660 = vmatprep.subr.msk.bf16.mxu0 %vm119_vm0, %v37_v0  ;;  %v121_v2 = vsel %vm119_vm0, %v37_v0, 0  ;;  %v40_v7 = vld [vmem:[%s899_s2 + $0x10] sm:$0xff]  ;;  %v39_v8 = vld [vmem:[%s899_s2 + $0x8] sm:$0xff] }
   0x3   :  { %607 = vmatpush3.bf16.msra.mxu0 %v121_v2  ;;  %608 = vmatprep.mubr.msk.bf16.mxu0 %vm106_vm1, %v667_v1  ;;  %v38_v6 = vld [vmem:[%s899_s2] sm:$0xff]  ;;  %v41_v9 = vld [vmem:[%s899_s2 + $0x18] sm:$0xff]  ;;  %v43_v12 = vld [vmem:[%s899_s2 + $0x28] sm:$0xff] }
   0x4   :  { %48 = vperm.xlu0 %665, %v38_v6   ;;  %58 = vperm.xlu1 %666, %v40_v7   ;;  %v670_v10 = vld [vmem:[%s898_s1 + $0x18] sm:$0xff]   ;;  %v42_v11 = vld [vmem:[%s899_s2 + $0x20] sm:$0xff]  ;;  %v44_v13 = vld [vmem:[%s899_s2 + $0x30] sm:$0xff] }
   0x5   :  { %v45_v14 = vld [vmem:[%s899_s2 + $0x38] sm:$0xff]  ;;  %v216_v15 = vld [vmem:[%s901_s4] sm:$0xff] }
   0x6   :  { %609 = vmatmul.mubr.msk.bf16.vlgmr.msra.gmra.mrb[0].mxu0 %vm106_vm1, %v668_v3 }
   0x7   :  { %612 = vmatprep.mubr.msk.bf16.mxu0 %vm106_vm1, %v669_v4 }
   0x8   :  { %53 = vperm.xlu0 %665, %v39_v8   ;;  %63 = vperm.xlu1 %666, %v41_v9  }
   0xc   :  { %68 = vperm.xlu0 %665, %v42_v11   ;;  %73 = vperm.xlu1 %666, %v43_v12  }
   0xe   :  { %613 = vmatmul.mubr.msk.bf16.gmra.mrb[4].mxu0 %vm106_vm1, %v670_v10 }
  0x10   :  { %78 = vperm.xlu0 %665, %v44_v13   ;;  %83 = vperm.xlu1 %666, %v45_v14  }
  0x11   :  { %13 = vsyncpa [#allocation4], 0  ;;  %v217_v16 = vld [vmem:[%s901_s4 + $0x8] sm:$0xff]  ;;  %v218_v17 = vld [vmem:[%s901_s4 + $0x10] sm:$0xff]  ;;  %vm352_vm2 = vcmask 523264   ;;  %v704_v11 = vmov 0.0  }
  0x12   :  { %v219_v18 = vld [vmem:[%s901_s4 + $0x18] sm:$0xff]  ;;  %v220_v19 = vld [vmem:[%s901_s4 + $0x20] sm:$0xff]  ;;  %v221_v20 = vld [vmem:[%s901_s4 + $0x28] sm:$0xff]  ;;  %640 = vmatprep.subr.bf16.mxu0 %v704_v11  ;;  %vm705_vm3 = vmmov 0   ;;  %s706_s24 = smov [#allocation3]  }
  0x13   :  { %v222_v21 = vld [vmem:[%s901_s4 + $0x30] sm:$0xff]  ;;  %v223_v22 = vld [vmem:[%s901_s4 + $0x38] sm:$0xff]  ;;  %v224_v23 = vld [vmem:[%s901_s4 + $0x40] sm:$0xff]  ;;  %656 = vmatprep.mubr.msk.bf16.mxu0 %vm705_vm3, %v704_v11  ;;  %s548_s25 = sshll.u32 %s706_s24, 4  ;;  %s549_s25 = int_to_ptr.vmem [resolvable:$true] %s548_s25 }
  0x14   :  { %234 = vperm.xlu0 %665, %v216_v15   ;;  %239 = vperm.xlu1 %666, %v217_v16   ;;  %v225_v24 = vld [vmem:[%s901_s4 + $0x48] sm:$0xff]  ;;  %v226_v25 = vld [vmem:[%s901_s4 + $0x50] sm:$0xff]  ;;  %v227_v26 = vld [vmem:[%s901_s4 + $0x58] sm:$0xff]  ;;  %s679_s1 = scalar_lea.vmem %s549_s25, 16  ;;  %s683_s26 = scalar_lea.vmem %s549_s25, 32 }
  0x15   :  { %v228_v27 = vld [vmem:[%s901_s4 + $0x60] sm:$0xff]  ;;  %v229_v28 = vld [vmem:[%s901_s4 + $0x68] sm:$0xff]  ;;  %v230_v29 = vld [vmem:[%s901_s4 + $0x70] sm:$0xff]  ;;  %p680_p0 = scmp.ne.s32.totalorder %s549_s25, %s679_s1  ;;  %p684_p1 = scmp.lt.s32.totalorder %s549_s25, %s549_s25 }
  0x16   :  { %v231_v30 = vld [vmem:[%s901_s4 + $0x78] sm:$0xff]  ;;  %v671_v31 = vld [vmem:[%s900_s3] sm:$0xff]   ;;  %v672_v4 = vld [vmem:[%s900_s3 + $0x8] sm:$0xff]   ;;  %p685_p2 = scmp.lt.s32.totalorder %s683_s26, %s679_s1 }
  0x17   :  { %624 = vmatprep.mubr.msk.bf16.mxu1 %vm352_vm2, %v671_v31  ;;  %v673_v5 = vld [vmem:[%s900_s3 + $0x10] sm:$0xff]   ;;  %v674_v6 = vld [vmem:[%s900_s3 + $0x18] sm:$0xff]   ;;  %v675_v7 = vld [vmem:[%s900_s3 + $0x20] sm:$0xff]  }
  0x18   :  { %244 = vperm.xlu0 %665, %v218_v17   ;;  %249 = vperm.xlu1 %666, %v219_v18   ;;  %v676_v8 = vld [vmem:[%s900_s3 + $0x28] sm:$0xff]   ;;  %v677_v9 = vld [vmem:[%s900_s3 + $0x30] sm:$0xff]   ;;  %v678_v10 = vld [vmem:[%s900_s3 + $0x38] sm:$0xff]   ;;  %p686_p3 = por %p685_p2, %p684_p1 }
  0x1a   :  { %p687_p4 = pnand %p686_p3, %p680_p0 }
  0x1c   :  { %254 = vperm.xlu0 %665, %v220_v19   ;;  %259 = vperm.xlu1 %666, %v221_v20  }
  0x20   :  { %264 = vperm.xlu0 %665, %v222_v21   ;;  %269 = vperm.xlu1 %666, %v223_v22  }
  0x24   :  { %274 = vperm.xlu0 %665, %v224_v23   ;;  %279 = vperm.xlu1 %666, %v225_v24  }
  0x28   :  { %284 = vperm.xlu0 %665, %v226_v25   ;;  %289 = vperm.xlu1 %666, %v227_v26  }
  0x2c   :  { %294 = vperm.xlu0 %665, %v228_v27   ;;  %299 = vperm.xlu1 %666, %v229_v28  }
  0x30   :  { %304 = vperm.xlu0 %665, %v230_v29   ;;  %309 = vperm.xlu1 %666, %v231_v30  }
  0x83   :  { %v49_v32 = vpop.permute.xlu0 %48  ;;  %v59_v33 = vpop.permute.xlu1 %58 }
  0x87   :  { %v54_v34 = vpop.permute.xlu0 %53  ;;  %v64_v35 = vpop.permute.xlu1 %63 }
  0x8b   :  { %v69_v39 = vpop.permute.xlu0 %68  ;;  %v74_v44 = vpop.permute.xlu1 %73 }
  0x8f   :  { %v79_v51 = vpop.permute.xlu0 %78  ;;  %v84_v56 = vpop.permute.xlu1 %83 }
  0x93   :  { %v235_v12 = vpop.permute.xlu0 %234  ;;  %v240_v13 = vpop.permute.xlu1 %239 }
  0x97   :  { %v245_v14 = vpop.permute.xlu0 %244  ;;  %v250_v15 = vpop.permute.xlu1 %249 }
  0x9b   :  { %v255_v16 = vpop.permute.xlu0 %254  ;;  %v260_v17 = vpop.permute.xlu1 %259 }
  0x9f   :  { %v265_v18 = vpop.permute.xlu0 %264  ;;  %v270_v22 = vpop.permute.xlu1 %269 }
  0xa3   :  { %v275_v30 = vpop.permute.xlu0 %274 }
  0xd9   :  { %v610_v36 = vpop.f32.mrb[0].mxu0 }
  0xda   :  { %v166_v37 = vadd.f32 %v610_v36, %v59_v33  ;;  %v157_v38 = vpop.f32.mrb[1].mxu0 }
  0xdb   :  { %v158_v40 = vadd.f32 %v157_v38, %v49_v32  ;;  %v611_v41 = vpop.f32.mrb[2].mxu0 }
  0xdc   :  { %v169_v42 = vadd.f32 %v611_v41, %v64_v35  ;;  %v160_v43 = vpop.f32.mrb[3].mxu0  ;;  %v190_v46 = vmax.f32 %v166_v37, 0.0 }
  0xdd   :  { %v161_v45 = vadd.f32 %v160_v43, %v54_v34  ;;  %v188_v48 = vmax.f32 %v158_v40, 0.0  ;;  %v280_v34 = vpop.permute.xlu1 %279  ;;  %v285_v43 = vpop.permute.xlu0 %284 }
  0xde   :  { %v191_v47 = vmax.f32 %v169_v42, 0.0 }
  0xdf   :  { %v189_v49 = vmax.f32 %v161_v45, 0.0 }
  0xe0   :  { %v197_v50 = vpack.c.bf16 %v191_v47, %v190_v46 }
  0xe1   :  { %v614_v52 = vpop.f32.mrb[4].mxu0  ;;  %v196_v53 = vpack.c.bf16 %v189_v49, %v188_v48  ;;  %v290_v47 = vpop.permute.xlu1 %289 }
  0xe2   :  { %v182_v54 = vadd.f32 %v614_v52, %v79_v51  ;;  %v173_v55 = vpop.f32.mrb[5].mxu0 }
  0xe3   :  { %v174_v57 = vadd.f32 %v173_v55, %v69_v39  ;;  %v615_v58 = vpop.f32.mrb[6].mxu0  ;;  %616 = vmatprep.subr.bf16.mxu1 %v196_v53  ;;  %v295_v55 = vpop.permute.xlu0 %294 }
  0xe4   :  { %v185_v59 = vadd.f32 %v615_v58, %v84_v56  ;;  %v176_v60 = vpop.f32.mrb[7].mxu0  ;;  %617 = vmatpush3.bf16.msra.mxu1 %v196_v53  ;;  %v194_v62 = vmax.f32 %v182_v54, 0.0 }
  0xe5   :  { %v177_v61 = vadd.f32 %v176_v60, %v74_v44  ;;  %618 = vmatprep.subr.bf16.mxu1 %v197_v50  ;;  %v192_v0 = vmax.f32 %v174_v57, 0.0  ;;  %v300_v60 = vpop.permute.xlu1 %299 }
  0xe6   :  { %v195_v63 = vmax.f32 %v185_v59, 0.0 }
  0xe7   :  { %v193_v1 = vmax.f32 %v177_v61, 0.0 }
  0xe8   :  { %v199_v2 = vpack.c.bf16 %v195_v63, %v194_v62  ;;  %619 = vmatpush3.bf16.msra.mxu1 %v197_v50 }
  0xe9   :  { %v198_v3 = vpack.c.bf16 %v193_v1, %v192_v0 }
  0xeb   :  { %620 = vmatprep.subr.bf16.mxu1 %v198_v3 }
  0xec   :  { %621 = vmatpush3.bf16.msra.mxu1 %v198_v3  ;;  %v305_v3 = vpop.permute.xlu0 %304 }
  0xed   :  { %622 = vmatprep.subr.bf16.mxu1 %v199_v2 }
  0xf0   :  { %623 = vmatpush3.bf16.msra.mxu1 %v199_v2 }
  0xf3   :  { %625 = vmatmul.mubr.msk.bf16.vlgmr.msra.gmra.mrb[0].mxu1 %vm352_vm2, %v672_v4 }
  0xf4   :  { %628 = vmatprep.mubr.msk.bf16.mxu1 %vm352_vm2, %v673_v5 }
  0xfb   :  { %629 = vmatmul.mubr.msk.bf16.gmra.mrb[4].mxu1 %vm352_vm2, %v674_v6 }
  0xfc   :  { %632 = vmatprep.mubr.msk.bf16.mxu1 %vm352_vm2, %v675_v7 }
 0x103   :  { %633 = vmatmul.mubr.msk.bf16.gmra.mrb[8].mxu1 %vm352_vm2, %v676_v8  ;;  %v310_v8 = vpop.permute.xlu1 %309 }
 0x104   :  { %636 = vmatprep.mubr.msk.bf16.mxu1 %vm352_vm2, %v677_v9 }
 0x10b   :  { %637 = vmatmul.mubr.msk.bf16.gmra.mrb[12].mxu1 %vm352_vm2, %v678_v10 }
 0x1c6   :  { %v626_v19 = vpop.f32.mrb[0].mxu1 }
 0x1c7   :  { %v420_v20 = vadd.f32 %v626_v19, %v245_v14  ;;  %v411_v21 = vpop.f32.mrb[1].mxu1 }
 0x1c8   :  { %v412_v23 = vadd.f32 %v411_v21, %v235_v12  ;;  %v627_v24 = vpop.f32.mrb[2].mxu1  ;;  %v498_v21 = vld [vmem:[%s902_s5] sm:$0x1] }
 0x1c9   :  { %v423_v25 = vadd.f32 %v627_v24, %v250_v15  ;;  %v414_v26 = vpop.f32.mrb[3].mxu1  ;;  %v476_v28 = vmax.f32 %v420_v20, 0.0 }
 0x1ca   :  { %v415_v27 = vadd.f32 %v414_v26, %v240_v13  ;;  %v474_v31 = vmax.f32 %v412_v23, 0.0 }
 0x1cb   :  { %v477_v29 = vmax.f32 %v423_v25, 0.0 }
 0x1cc   :  { %v475_v32 = vmax.f32 %v415_v27, 0.0 }
 0x1cd   :  { %v491_v33 = vpack.c.bf16 %v477_v29, %v476_v28 }
 0x1ce   :  { %v490_v35 = vpack.c.bf16 %v475_v32, %v474_v31  ;;  %v630_v36 = vpop.f32.mrb[4].mxu1 }
 0x1cf   :  { %v436_v37 = vadd.f32 %v630_v36, %v265_v18  ;;  %v427_v38 = vpop.f32.mrb[5].mxu1 }
 0x1d0   :  { %v428_v39 = vadd.f32 %v427_v38, %v255_v16  ;;  %v631_v40 = vpop.f32.mrb[6].mxu1  ;;  %641 = vmatpush3.bf16.msra.mxu0 %v490_v35 }
 0x1d1   :  { %v439_v41 = vadd.f32 %v631_v40, %v270_v22  ;;  %v430_v42 = vpop.f32.mrb[7].mxu1  ;;  %642 = vmatprep.subr.bf16.mxu0 %v704_v11  ;;  %v480_v45 = vmax.f32 %v436_v37, 0.0  ;;  %v500_v22 = vstv %s903_s6 }
 0x1d2   :  { %v431_v44 = vadd.f32 %v430_v42, %v260_v17  ;;  %v478_v48 = vmax.f32 %v428_v39, 0.0 }
 0x1d3   :  { %v481_v46 = vmax.f32 %v439_v41, 0.0 }
 0x1d4   :  { %v479_v49 = vmax.f32 %v431_v44, 0.0  ;;  %643 = vmatpush3.bf16.msra.mxu0 %v491_v33 }
 0x1d5   :  { %v493_v50 = vpack.c.bf16 %v481_v46, %v480_v45  ;;  %644 = vmatprep.subr.bf16.mxu0 %v704_v11 }
 0x1d6   :  { %v492_v51 = vpack.c.bf16 %v479_v49, %v478_v48  ;;  %v634_v52 = vpop.f32.mrb[8].mxu1 }
 0x1d7   :  { %v452_v53 = vadd.f32 %v634_v52, %v285_v43  ;;  %v443_v54 = vpop.f32.mrb[9].mxu1 }
 0x1d8   :  { %v444_v56 = vadd.f32 %v443_v54, %v275_v30  ;;  %v635_v57 = vpop.f32.mrb[10].mxu1  ;;  %645 = vmatpush3.bf16.msra.mxu0 %v492_v51 }
 0x1d9   :  { %v455_v58 = vadd.f32 %v635_v57, %v290_v47  ;;  %v446_v59 = vpop.f32.mrb[11].mxu1  ;;  %646 = vmatprep.subr.bf16.mxu0 %v704_v11  ;;  %v484_v62 = vmax.f32 %v452_v53, 0.0 }
 0x1da   :  { %v447_v61 = vadd.f32 %v446_v59, %v280_v34  ;;  %v482_v0 = vmax.f32 %v444_v56, 0.0 }
 0x1db   :  { %v485_v63 = vmax.f32 %v455_v58, 0.0 }
 0x1dc   :  { %v483_v1 = vmax.f32 %v447_v61, 0.0  ;;  %647 = vmatpush3.bf16.msra.mxu0 %v493_v50 }
 0x1dd   :  { %v495_v2 = vpack.c.bf16 %v485_v63, %v484_v62  ;;  %648 = vmatprep.subr.bf16.mxu0 %v704_v11 }
 0x1de   :  { %v494_v4 = vpack.c.bf16 %v483_v1, %v482_v0  ;;  %v638_v5 = vpop.f32.mrb[12].mxu1 }
 0x1df   :  { %v468_v6 = vadd.f32 %v638_v5, %v305_v3  ;;  %v459_v7 = vpop.f32.mrb[13].mxu1 }
 0x1e0   :  { %v460_v9 = vadd.f32 %v459_v7, %v295_v55  ;;  %v639_v10 = vpop.f32.mrb[14].mxu1  ;;  %649 = vmatpush3.bf16.msra.mxu0 %v494_v4 }
 0x1e1   :  { %v471_v12 = vadd.f32 %v639_v10, %v310_v8  ;;  %v462_v13 = vpop.f32.mrb[15].mxu1  ;;  %650 = vmatprep.subr.bf16.mxu0 %v704_v11  ;;  %v488_v15 = vmax.f32 %v468_v6, 0.0 }
 0x1e2   :  { %v463_v14 = vadd.f32 %v462_v13, %v300_v60  ;;  %v486_v17 = vmax.f32 %v460_v9, 0.0 }
 0x1e3   :  { %v489_v16 = vmax.f32 %v471_v12, 0.0 }
 0x1e4   :  { %v487_v18 = vmax.f32 %v463_v14, 0.0  ;;  %651 = vmatpush3.bf16.msra.mxu0 %v495_v2 }
 0x1e5   :  { %v497_v19 = vpack.c.bf16 %v489_v16, %v488_v15  ;;  %652 = vmatprep.subr.bf16.mxu0 %v704_v11 }
 0x1e6   :  { %v496_v20 = vpack.c.bf16 %v487_v18, %v486_v17 }
 0x1e8   :  { %653 = vmatpush3.bf16.msra.mxu0 %v496_v20 }
 0x1e9   :  { %654 = vmatprep.subr.bf16.mxu0 %v704_v11 }
 0x1ec   :  { %655 = vmatpush3.bf16.msra.mxu0 %v497_v19 }
 0x1ef   :  { %657 = vmatmul.mubr.bf16.vlgmr.msra.gmra.mrb[8].mxu0 %v498_v21 }
 0x2c2   :  { %v535_v23 = vpop.f32.mrb[8].mxu0 }
 0x2c3   :  { %v536_v24 = vadd.f32 %v535_v23, %v500_v22  ;;  %v658_v25 = vpop.f32.mrb[9].mxu0 }
 0x2c4   :  { %v538_v26 = vpop.f32.mrb[10].mxu0 }
 0x2c5   :  { %541 = vst [vmem:[#allocation3] sm:$0x1] %v536_v24  ;;  %v659_v27 = vpop.f32.mrb[11].mxu0 }
 0x2c6   :  { %690 = shalt.err (!%p687_p4)
}
 0x2c7   :  { %s691_s6 = scalar_lea.hbm %s904_s7, 16 }
 0x2c8   :  { %p692_p5 = scmp.ne.s32.totalorder %s904_s7, %s691_s6  ;;  %p695_p6 = scmp.lt.u32.totalorder %s691_s6, %s904_s7 }
 0x2ca   :  { %p697_p7 = pnand %p695_p6, %p692_p5 }
 0x2cc   :  { %700 = shalt.err (!%p697_p7)
}
 0x2cd   :  { %551 = dma.vmem_to_hbm [thread:$0]  %s549_s25, 16, %s904_s7, [#allocation4]  }
 0x2ce   :  { %701 = dma.done.wait [#allocation4], 16  }
 0x2cf   :  { %702 = vsyncadd [#allocation4], 4294967280 }
 0x2d0   :  { %555 = vsyncpa [#allocation4], 1 }

</bundles_post_ra>
